<compile_context>
chip_gen: v5e
topology: v5e:2x2
jax: 0.10.0
libtpu: 0.0.40
codegen_flags: <defaults>
</compile_context>

<pallas_src>
import functools
import math

import jax
import jax.numpy as jnp
import numpy as np
from jax.experimental import pallas as pl
from jax.experimental.pallas import tpu as pltpu


def gqa_kernel(x_ref, wq_ref, wk_ref, wv_ref, wo_ref,
               cos_ref, sin_ref, bo_ref, o_ref, acc_ref,
               *, group, head_size, kv_heads, mxu_dtype):
    g = pl.program_id(1)            # kv-head group index (reduction axis)
    d = head_size

    @pl.when(g == 0)
    def _init():
        acc_ref[...] = jnp.zeros_like(acc_ref)

    x = x_ref[0].astype(mxu_dtype)                                   # (T, C)

    # Q/K/V projections for THIS kv-head group only (MXU, f32 accumulate).
    # 1/sqrt(d) is already folded into Wq on the host.
    q = jnp.dot(x, wq_ref[0], preferred_element_type=jnp.float32)    # (T, group*d)
    k = jnp.dot(x, wk_ref[0], preferred_element_type=jnp.float32)    # (T, d)
    v = jnp.dot(x, wv_ref[0], preferred_element_type=jnp.float32)    # (T, d)

    cos = cos_ref[...]                                               # (T, d)
    sin = sin_ref[...]                                               # (T, d), sign folded

    def rope(z):
        # z is in de-interleaved (even|odd) column layout -> one half-rotation.
        # (For d a multiple of 128 this roll lands on the XLU slot.)
        return z * cos + jnp.roll(z, d // 2, axis=-1) * sin

    kT = rope(k).T.astype(mxu_dtype)                                 # (d, T), one transpose
    v_c = v.astype(mxu_dtype)                                        # (T, d)

    contrib = None
    for h in range(group):           # static unroll over group = n_heads // kv_heads (small)
        qh = rope(q[:, h * d:(h + 1) * d]).astype(mxu_dtype)         # (T, d)
        s = jnp.dot(qh, kT, preferred_element_type=jnp.float32)      # (T, T)
        s = s - jnp.max(s, axis=-1, keepdims=True)
        p = jnp.exp(s)
        p = p * pl.reciprocal(jnp.sum(p, axis=-1, keepdims=True), approx=True)
        yh = jnp.dot(p.astype(mxu_dtype), v_c,
                     preferred_element_type=jnp.float32)             # (T, d)
        # Fused output projection: this head's row-slab of Wo; no head concat.
        c = jnp.dot(yh.astype(mxu_dtype), wo_ref[0, h * d:(h + 1) * d, :],
                    preferred_element_type=jnp.float32)              # (T, C)
        contrib = c if contrib is None else contrib + c

    acc_ref[...] += contrib

    @pl.when(g == kv_heads - 1)
    def _finalize():
        o_ref[0] = (acc_ref[...] + bo_ref[...]).astype(o_ref.dtype)


def gqa_forward(x, wq, wk, wv, wo, bo, inv_freqs, *,
                n_heads, kv_heads, mxu_dtype=jnp.bfloat16):
    """Fused GQA forward.  Linear weights are stored as (in_features, out_features)."""
    B, T, C = x.shape
    d = C // n_heads
    assert n_heads % kv_heads == 0 and n_heads > kv_heads
    assert d % 2 == 0
    group = n_heads // kv_heads
    gd = group * d
    scale = 1.0 / math.sqrt(d)

    # Per-head column de-interleave (even lanes first, odd second).  Applied to
    # BOTH Wq and Wk, so q·kᵀ is invariant; v / Wo keep the original layout.
    perm = jnp.concatenate([jnp.arange(0, d, 2), jnp.arange(1, d, 2)])

    wq_p = (wq * scale).reshape(C, n_heads, d)[:, :, perm].reshape(C, n_heads * d)
    wk_p = wk.reshape(C, kv_heads, d)[:, :, perm].reshape(C, kv_heads * d)

    # Regroup weights per kv head so each grid step only streams its slabs.
    wq3 = wq_p.reshape(C, kv_heads, gd).transpose(1, 0, 2).astype(mxu_dtype)  # (Hk, C, g*d)
    wk3 = wk_p.reshape(C, kv_heads, d).transpose(1, 0, 2).astype(mxu_dtype)   # (Hk, C, d)
    wv3 = wv.reshape(C, kv_heads, d).transpose(1, 0, 2).astype(mxu_dtype)     # (Hk, C, d)
    wo3 = wo.reshape(kv_heads, gd, C).astype(mxu_dtype)                       # (Hk, g*d, C)
    bo2 = bo.reshape(1, C).astype(jnp.float32)

    # Trig tables in the de-interleaved layout, rotation sign folded into sin:
    #   out[j < d/2]  = z_e*cos - z_o*sin   -> sin_first  = -sin
    #   out[j >= d/2] = z_o*cos + z_e*sin   -> sin_second = +sin
    cos_p = jnp.cos(inv_freqs)[:, perm].astype(jnp.float32)                   # (T, d)
    sign = jnp.concatenate([-jnp.ones(d // 2, jnp.float32),
                            jnp.ones(d // 2, jnp.float32)])
    sin_p = (jnp.sin(inv_freqs)[:, perm] * sign[None, :]).astype(jnp.float32)  # (T, d)

    kernel = functools.partial(gqa_kernel, group=group, head_size=d,
                               kv_heads=kv_heads, mxu_dtype=mxu_dtype)

    # Advisory cost estimate for XLA scheduling around the custom call.
    flops = int(2 * B * T * C * (n_heads + 2 * kv_heads) * d
                + 4 * B * n_heads * T * T * d
                + 2 * B * T * C * C)
    transcendentals = int(B * n_heads * T * T)
    wbytes = int((wq3.size + wk3.size + wv3.size + wo3.size)
                 * jnp.dtype(mxu_dtype).itemsize)
    bytes_accessed = int(2 * x.size * x.dtype.itemsize + B * wbytes
                         + (cos_p.size + sin_p.size + bo2.size) * 4)

    return pl.pallas_call(
        kernel,
        out_shape=jax.ShapeDtypeStruct((B, T, C), x.dtype),
        grid_spec=pltpu.PrefetchScalarGridSpec(
            num_scalar_prefetch=0,
            grid=(B, kv_heads),                       # reduction (kv group) axis last
            in_specs=[
                pl.BlockSpec((1, T, C), lambda b, g: (b, 0, 0)),     # x
                pl.BlockSpec((1, C, gd), lambda b, g: (g, 0, 0)),    # Wq slab
                pl.BlockSpec((1, C, d), lambda b, g: (g, 0, 0)),     # Wk slab
                pl.BlockSpec((1, C, d), lambda b, g: (g, 0, 0)),     # Wv slab
                pl.BlockSpec((1, gd, C), lambda b, g: (g, 0, 0)),    # Wo slab
                pl.BlockSpec((T, d), lambda b, g: (0, 0)),           # cos (permuted)
                pl.BlockSpec((T, d), lambda b, g: (0, 0)),           # sin (permuted, signed)
                pl.BlockSpec((1, C), lambda b, g: (0, 0)),           # c_proj bias
            ],
            out_specs=pl.BlockSpec((1, T, C), lambda b, g: (b, 0, 0)),
            scratch_shapes=[pltpu.VMEM((T, C), jnp.float32)],        # c_proj accumulator
        ),
        compiler_params=pltpu.CompilerParams(
            dimension_semantics=("parallel", "arbitrary")),
        cost_estimate=pl.CostEstimate(flops=flops,
                                      transcendentals=transcendentals,
                                      bytes_accessed=bytes_accessed),
    )(x, wq3, wk3, wv3, wo3, cos_p, sin_p, bo2)


def ref_forward(x, wq, wk, wv, wo, bo, inv_freqs, *, n_heads, kv_heads):
    """Pure-JAX reference mirroring the PyTorch module (flash path, mask=None)."""
    B, T, C = x.shape
    d = C // n_heads
    q = (x @ wq).reshape(B, T, n_heads, d).transpose(0, 2, 1, 3)
    k = (x @ wk).reshape(B, T, kv_heads, d).transpose(0, 2, 1, 3)
    v = (x @ wv).reshape(B, T, kv_heads, d).transpose(0, 2, 1, 3)

    def rope(z):
        rot = jnp.stack((-z[..., 1::2], z[..., ::2]), axis=-1).reshape(z.shape)
        return z * jnp.cos(inv_freqs) + rot * jnp.sin(inv_freqs)

    q = rope(q)
    k = rope(k)
    rep = n_heads // kv_heads
    k = jnp.repeat(k, rep, axis=1)
    v = jnp.repeat(v, rep, axis=1)
    s = (q @ jnp.swapaxes(k, -1, -2)) / math.sqrt(d)
    p = jax.nn.softmax(s, axis=-1)
    y = p @ v
    y = y.transpose(0, 2, 1, 3).reshape(B, T, C)
    return y @ wo + bo


if __name__ == "__main__":
    # small config consistent with PinyConfig semantics (n_heads > kv_heads)
    B, T = 2, 8
    n_embd, n_heads, kv_heads = 32, 4, 2
    head_size = n_embd // n_heads
    rope_base = 10000.0

    key = jax.random.PRNGKey(0)
    kx, kq, kk, kvk, ko, kb = jax.random.split(key, 6)

    x = jax.random.normal(kx, (B, T, n_embd), dtype=jnp.float32)
    # weights stored as (in, out)  (transposed vs. nn.Linear's (out, in))
    wq = jax.random.normal(kq, (n_embd, n_heads * head_size), dtype=jnp.float32) * 0.02
    wk = jax.random.normal(kk, (n_embd, kv_heads * head_size), dtype=jnp.float32) * 0.02
    wv = jax.random.normal(kvk, (n_embd, kv_heads * head_size), dtype=jnp.float32) * 0.02
    wo = jax.random.normal(ko, (n_embd, n_embd), dtype=jnp.float32) * 0.02
    bo = jax.random.normal(kb, (n_embd,), dtype=jnp.float32) * 0.02

    # inv_freqs (T, head_size): per-position rotation angles, repeated per pair
    freqs = 1.0 / (rope_base ** (jnp.arange(0, head_size, 2, dtype=jnp.float32) / head_size))
    angles = jnp.arange(T, dtype=jnp.float32)[:, None] * freqs[None, :]     # (T, d/2)
    inv_freqs = jnp.repeat(angles, 2, axis=-1)                              # (T, d)

    ref = ref_forward(x, wq, wk, wv, wo, bo, inv_freqs,
                      n_heads=n_heads, kv_heads=kv_heads)

    # f32-MXU path: tight numerical check against the f32 reference.
    out_f32 = gqa_forward(x, wq, wk, wv, wo, bo, inv_freqs,
                          n_heads=n_heads, kv_heads=kv_heads,
                          mxu_dtype=jnp.float32)
    out_f32 = jax.block_until_ready(out_f32)
    assert out_f32.shape == (B, T, n_embd)
    assert np.allclose(np.asarray(out_f32), np.asarray(ref), atol=2e-3, rtol=2e-3)

    # default bf16-MXU path (f32 accumulation): looser tolerance.
    out_bf16 = gqa_forward(x, wq, wk, wv, wo, bo, inv_freqs,
                           n_heads=n_heads, kv_heads=kv_heads)
    out_bf16 = jax.block_until_ready(out_bf16)
    assert np.allclose(np.asarray(out_bf16), np.asarray(ref), atol=2e-2, rtol=2e-2)

    print("KERNEL_OK")
</pallas_src>

<mosaic_0001>
module attributes {stable_mosaic.version = 11 : i64} {
  func.func @gqa_kernel(%arg0: i32, %arg1: i32, %arg2: memref<1x8x32xf32, #tpu.memory_space<vmem>>, %arg3: memref<1x32x16xf32, #tpu.memory_space<vmem>>, %arg4: memref<1x32x8xf32, #tpu.memory_space<vmem>>, %arg5: memref<1x32x8xf32, #tpu.memory_space<vmem>>, %arg6: memref<1x16x32xf32, #tpu.memory_space<vmem>>, %arg7: memref<8x8xf32, #tpu.memory_space<vmem>>, %arg8: memref<8x8xf32, #tpu.memory_space<vmem>>, %arg9: memref<1x32xf32, #tpu.memory_space<vmem>>, %arg10: memref<1x8x32xf32, #tpu.memory_space<vmem>>, %arg11: memref<8x32xf32, #tpu.memory_space<vmem>>) attributes {dimension_semantics = [#tpu.dimension_semantics<parallel>, #tpu.dimension_semantics<arbitrary>], iteration_bounds = array<i64: 2, 2>, scalar_prefetch = 0 : i64, scratch_operands = 1 : i64, tpu.core_type = #tpu.core_type<tc>, window_params = [{transform_indices = @transform_0, window_bounds = array<i64: 1, 8, 32>}, {transform_indices = @transform_1, window_bounds = array<i64: 1, 32, 16>}, {transform_indices = @transform_2, window_bounds = array<i64: 1, 32, 8>}, {transform_indices = @transform_3, window_bounds = array<i64: 1, 32, 8>}, {transform_indices = @transform_4, window_bounds = array<i64: 1, 16, 32>}, {pipeline_mode = #tpu.pipeline_mode<synchronous>, transform_indices = @transform_5, window_bounds = array<i64: 8, 8>}, {pipeline_mode = #tpu.pipeline_mode<synchronous>, transform_indices = @transform_6, window_bounds = array<i64: 8, 8>}, {pipeline_mode = #tpu.pipeline_mode<synchronous>, transform_indices = @transform_7, window_bounds = array<i64: 1, 32>}, {transform_indices = @transform_8, window_bounds = array<i64: 1, 8, 32>}]} {
    %c0_i32 = arith.constant 0 : i32
    %0 = arith.cmpi eq, %arg1, %c0_i32 : i32
    %1 = arith.extui %0 : i1 to i32
    %c0_i32_0 = arith.constant 0 : i32
    %2 = arith.cmpi ne, %1, %c0_i32_0 : i32
    scf.if %2 {
      %cst_38 = arith.constant 0.000000e+00 : f32
      %74 = vector.broadcast %cst_38 : f32 to vector<8x32xf32>
      %c0_39 = arith.constant 0 : index
      %c0_40 = arith.constant 0 : index
      %75 = vector.load %arg11[%c0_39, %c0_40] : memref<8x32xf32, #tpu.memory_space<vmem>>, vector<8x32xf32>
      tpu.vector_store %arg11[%c0_39, %c0_40], %74 {strides = array<i32>} : memref<8x32xf32, #tpu.memory_space<vmem>>, vector<8x32xf32>,
    } else {
    }
    %c0 = arith.constant 0 : index
    %c0_1 = arith.constant 0 : index
    %c0_2 = arith.constant 0 : index
    %3 = vector.load %arg2[%c0, %c0_1, %c0_2] : memref<1x8x32xf32, #tpu.memory_space<vmem>>, vector<1x8x32xf32>
    %4 = vector.shape_cast %3 : vector<1x8x32xf32> to vector<8x32xf32>
    %c0_3 = arith.constant 0 : index
    %c0_4 = arith.constant 0 : index
    %c0_5 = arith.constant 0 : index
    %5 = vector.load %arg3[%c0_3, %c0_4, %c0_5] : memref<1x32x16xf32, #tpu.memory_space<vmem>>, vector<1x32x16xf32>
    %6 = vector.shape_cast %5 : vector<1x32x16xf32> to vector<32x16xf32>
    %cst = arith.constant dense<0.000000e+00> : vector<8x16xf32>
    %7 = tpu.matmul %4, %6, %cst {dimension_numbers = #tpu.dot_dimension_numbers<[1], [0], [0], [1], [0, 0, 1, 1], [], []>} : vector<8x32xf32>, vector<32x16xf32>, vector<8x16xf32> -> vector<8x16xf32>
    %c0_6 = arith.constant 0 : index
    %c0_7 = arith.constant 0 : index
    %c0_8 = arith.constant 0 : index
    %8 = vector.load %arg4[%c0_6, %c0_7, %c0_8] : memref<1x32x8xf32, #tpu.memory_space<vmem>>, vector<1x32x8xf32>
    %9 = vector.shape_cast %8 : vector<1x32x8xf32> to vector<32x8xf32>
    %cst_9 = arith.constant dense<0.000000e+00> : vector<8x8xf32>
    %10 = tpu.matmul %4, %9, %cst_9 {dimension_numbers = #tpu.dot_dimension_numbers<[1], [0], [0], [1], [0, 0, 1, 1], [], []>} : vector<8x32xf32>, vector<32x8xf32>, vector<8x8xf32> -> vector<8x8xf32>
    %c0_10 = arith.constant 0 : index
    %c0_11 = arith.constant 0 : index
    %c0_12 = arith.constant 0 : index
    %11 = vector.load %arg5[%c0_10, %c0_11, %c0_12] : memref<1x32x8xf32, #tpu.memory_space<vmem>>, vector<1x32x8xf32>
    %12 = vector.shape_cast %11 : vector<1x32x8xf32> to vector<32x8xf32>
    %cst_13 = arith.constant dense<0.000000e+00> : vector<8x8xf32>
    %13 = tpu.matmul %4, %12, %cst_13 {dimension_numbers = #tpu.dot_dimension_numbers<[1], [0], [0], [1], [0, 0, 1, 1], [], []>} : vector<8x32xf32>, vector<32x8xf32>, vector<8x8xf32> -> vector<8x8xf32>
    %c0_14 = arith.constant 0 : index
    %c0_15 = arith.constant 0 : index
    %14 = vector.load %arg7[%c0_14, %c0_15] : memref<8x8xf32, #tpu.memory_space<vmem>>, vector<8x8xf32>
    %c0_16 = arith.constant 0 : index
    %c0_17 = arith.constant 0 : index
    %15 = vector.load %arg8[%c0_16, %c0_17] : memref<8x8xf32, #tpu.memory_space<vmem>>, vector<8x8xf32>
    %16 = arith.mulf %10, %14 : vector<8x8xf32>
    %17 = vector.extract_strided_slice %10 {offsets = [0, 4], sizes = [8, 4], strides = [1, 1]} : vector<8x8xf32> to vector<8x4xf32>
    %18 = vector.extract_strided_slice %10 {offsets = [0, 0], sizes = [8, 4], strides = [1, 1]} : vector<8x8xf32> to vector<8x4xf32>
    %19 = tpu.concatenate %17, %18 in 1 : vector<8x4xf32>, vector<8x4xf32> -> vector<8x8xf32>
    %20 = arith.mulf %19, %15 : vector<8x8xf32>
    %21 = arith.addf %16, %20 : vector<8x8xf32>
    %22 = tpu.transpose %21, [1, 0] : vector<8x8xf32> -> vector<8x8xf32>
    %23 = vector.extract_strided_slice %7 {offsets = [0, 0], sizes = [8, 8], strides = [1, 1]} : vector<8x16xf32> to vector<8x8xf32>
    %24 = arith.mulf %23, %14 : vector<8x8xf32>
    %25 = vector.extract_strided_slice %23 {offsets = [0, 4], sizes = [8, 4], strides = [1, 1]} : vector<8x8xf32> to vector<8x4xf32>
    %26 = vector.extract_strided_slice %23 {offsets = [0, 0], sizes = [8, 4], strides = [1, 1]} : vector<8x8xf32> to vector<8x4xf32>
    %27 = tpu.concatenate %25, %26 in 1 : vector<8x4xf32>, vector<8x4xf32> -> vector<8x8xf32>
    %28 = arith.mulf %27, %15 : vector<8x8xf32>
    %29 = arith.addf %24, %28 : vector<8x8xf32>
    %cst_18 = arith.constant dense<0.000000e+00> : vector<8x8xf32>
    %30 = tpu.matmul %29, %22, %cst_18 {dimension_numbers = #tpu.dot_dimension_numbers<[1], [0], [0], [1], [0, 0, 1, 1], [], []>} : vector<8x8xf32>, vector<8x8xf32>, vector<8x8xf32> -> vector<8x8xf32>
    %cst_19 = arith.constant dense<0xFF800000> : vector<8xf32>
    %31 = vector.multi_reduction <maximumf>, %30, %cst_19 [1] : vector<8x8xf32> to vector<8xf32>
    %32 = vector.shape_cast %31 : vector<8xf32> to vector<8x1xf32>
    %33 = vector.broadcast %32 : vector<8x1xf32> to vector<8x8xf32>
    %34 = arith.subf %30, %33 : vector<8x8xf32>
    %35 = math.exp %34 : vector<8x8xf32>
    %cst_20 = arith.constant dense<0.000000e+00> : vector<8xf32>
    %36 = vector.multi_reduction <add>, %35, %cst_20 [1] : vector<8x8xf32> to vector<8xf32>
    %37 = vector.shape_cast %36 : vector<8xf32> to vector<8x1xf32>
    %38 = tpu.reciprocal %37 {approx = true} : vector<8x1xf32> -> vector<8x1xf32>
    %39 = vector.broadcast %38 : vector<8x1xf32> to vector<8x8xf32>
    %40 = arith.mulf %35, %39 : vector<8x8xf32>
    %cst_21 = arith.constant dense<0.000000e+00> : vector<8x8xf32>
    %41 = tpu.matmul %40, %13, %cst_21 {dimension_numbers = #tpu.dot_dimension_numbers<[1], [0], [0], [1], [0, 0, 1, 1], [], []>} : vector<8x8xf32>, vector<8x8xf32>, vector<8x8xf32> -> vector<8x8xf32>
    %c0_22 = arith.constant 0 : index
    %c0_23 = arith.constant 0 : index
    %c0_24 = arith.constant 0 : index
    %42 = vector.load %arg6[%c0_22, %c0_23, %c0_24] : memref<1x16x32xf32, #tpu.memory_space<vmem>>, vector<1x8x32xf32>
    %43 = vector.shape_cast %42 : vector<1x8x32xf32> to vector<8x32xf32>
    %cst_25 = arith.constant dense<0.000000e+00> : vector<8x32xf32>
    %44 = tpu.matmul %41, %43, %cst_25 {dimension_numbers = #tpu.dot_dimension_numbers<[1], [0], [0], [1], [0, 0, 1, 1], [], []>} : vector<8x8xf32>, vector<8x32xf32>, vector<8x32xf32> -> vector<8x32xf32>
    %45 = vector.extract_strided_slice %7 {offsets = [0, 8], sizes = [8, 8], strides = [1, 1]} : vector<8x16xf32> to vector<8x8xf32>
    %46 = arith.mulf %45, %14 : vector<8x8xf32>
    %47 = vector.extract_strided_slice %45 {offsets = [0, 4], sizes = [8, 4], strides = [1, 1]} : vector<8x8xf32> to vector<8x4xf32>
    %48 = vector.extract_strided_slice %45 {offsets = [0, 0], sizes = [8, 4], strides = [1, 1]} : vector<8x8xf32> to vector<8x4xf32>
    %49 = tpu.concatenate %47, %48 in 1 : vector<8x4xf32>, vector<8x4xf32> -> vector<8x8xf32>
    %50 = arith.mulf %49, %15 : vector<8x8xf32>
    %51 = arith.addf %46, %50 : vector<8x8xf32>
    %cst_26 = arith.constant dense<0.000000e+00> : vector<8x8xf32>
    %52 = tpu.matmul %51, %22, %cst_26 {dimension_numbers = #tpu.dot_dimension_numbers<[1], [0], [0], [1], [0, 0, 1, 1], [], []>} : vector<8x8xf32>, vector<8x8xf32>, vector<8x8xf32> -> vector<8x8xf32>
    %cst_27 = arith.constant dense<0xFF800000> : vector<8xf32>
    %53 = vector.multi_reduction <maximumf>, %52, %cst_27 [1] : vector<8x8xf32> to vector<8xf32>
    %54 = vector.shape_cast %53 : vector<8xf32> to vector<8x1xf32>
    %55 = vector.broadcast %54 : vector<8x1xf32> to vector<8x8xf32>
    %56 = arith.subf %52, %55 : vector<8x8xf32>
    %57 = math.exp %56 : vector<8x8xf32>
    %cst_28 = arith.constant dense<0.000000e+00> : vector<8xf32>
    %58 = vector.multi_reduction <add>, %57, %cst_28 [1] : vector<8x8xf32> to vector<8xf32>
    %59 = vector.shape_cast %58 : vector<8xf32> to vector<8x1xf32>
    %60 = tpu.reciprocal %59 {approx = true} : vector<8x1xf32> -> vector<8x1xf32>
    %61 = vector.broadcast %60 : vector<8x1xf32> to vector<8x8xf32>
    %62 = arith.mulf %57, %61 : vector<8x8xf32>
    %cst_29 = arith.constant dense<0.000000e+00> : vector<8x8xf32>
    %63 = tpu.matmul %62, %13, %cst_29 {dimension_numbers = #tpu.dot_dimension_numbers<[1], [0], [0], [1], [0, 0, 1, 1], [], []>} : vector<8x8xf32>, vector<8x8xf32>, vector<8x8xf32> -> vector<8x8xf32>
    %c0_30 = arith.constant 0 : index
    %c8 = arith.constant 8 : index
    %c0_31 = arith.constant 0 : index
    %64 = vector.load %arg6[%c0_30, %c8, %c0_31] : memref<1x16x32xf32, #tpu.memory_space<vmem>>, vector<1x8x32xf32>
    %65 = vector.shape_cast %64 : vector<1x8x32xf32> to vector<8x32xf32>
    %cst_32 = arith.constant dense<0.000000e+00> : vector<8x32xf32>
    %66 = tpu.matmul %63, %65, %cst_32 {dimension_numbers = #tpu.dot_dimension_numbers<[1], [0], [0], [1], [0, 0, 1, 1], [], []>} : vector<8x8xf32>, vector<8x32xf32>, vector<8x32xf32> -> vector<8x32xf32>
    %67 = arith.addf %44, %66 : vector<8x32xf32>
    %c0_33 = arith.constant 0 : index
    %c0_34 = arith.constant 0 : index
    %68 = vector.load %arg11[%c0_33, %c0_34] : memref<8x32xf32, #tpu.memory_space<vmem>>, vector<8x32xf32>
    %69 = arith.addf %68, %67 : vector<8x32xf32>
    %c0_35 = arith.constant 0 : index
    %c0_36 = arith.constant 0 : index
    %70 = vector.load %arg11[%c0_35, %c0_36] : memref<8x32xf32, #tpu.memory_space<vmem>>, vector<8x32xf32>
    tpu.vector_store %arg11[%c0_35, %c0_36], %69 {strides = array<i32>} : memref<8x32xf32, #tpu.memory_space<vmem>>, vector<8x32xf32>,
    %c1_i32 = arith.constant 1 : i32
    %71 = arith.cmpi eq, %arg1, %c1_i32 : i32
    %72 = arith.extui %71 : i1 to i32
    %c0_i32_37 = arith.constant 0 : i32
    %73 = arith.cmpi ne, %72, %c0_i32_37 : i32
    scf.if %73 {
      %c0_38 = arith.constant 0 : index
      %c0_39 = arith.constant 0 : index
      %74 = vector.load %arg11[%c0_38, %c0_39] : memref<8x32xf32, #tpu.memory_space<vmem>>, vector<8x32xf32>
      %c0_40 = arith.constant 0 : index
      %c0_41 = arith.constant 0 : index
      %75 = vector.load %arg9[%c0_40, %c0_41] : memref<1x32xf32, #tpu.memory_space<vmem>>, vector<1x32xf32>
      %76 = vector.broadcast %75 : vector<1x32xf32> to vector<8x32xf32>
      %77 = arith.addf %74, %76 : vector<8x32xf32>
      %c0_42 = arith.constant 0 : index
      %c0_43 = arith.constant 0 : index
      %c0_44 = arith.constant 0 : index
      %78 = vector.load %arg10[%c0_42, %c0_43, %c0_44] : memref<1x8x32xf32, #tpu.memory_space<vmem>>, vector<1x8x32xf32>
      %79 = vector.shape_cast %78 : vector<1x8x32xf32> to vector<8x32xf32>
      %80 = vector.shape_cast %77 : vector<8x32xf32> to vector<1x8x32xf32>
      tpu.vector_store %arg10[%c0_42, %c0_43, %c0_44], %80 {strides = array<i32>} : memref<1x8x32xf32, #tpu.memory_space<vmem>>, vector<1x8x32xf32>,
    } else {
    }
    return
  }
  func.func @transform_0(%arg0: i32, %arg1: i32) -> (i32, i32, i32) {
    %c0_i32 = arith.constant 0 : i32
    %c0_i32_0 = arith.constant 0 : i32
    %c0_i32_1 = arith.constant 0 : i32
    return %arg0, %c0_i32, %c0_i32_0 : i32, i32, i32
  }
  func.func @transform_1(%arg0: i32, %arg1: i32) -> (i32, i32, i32) {
    %c0_i32 = arith.constant 0 : i32
    %c0_i32_0 = arith.constant 0 : i32
    %c0_i32_1 = arith.constant 0 : i32
    return %arg1, %c0_i32, %c0_i32_0 : i32, i32, i32
  }
  func.func @transform_2(%arg0: i32, %arg1: i32) -> (i32, i32, i32) {
    %c0_i32 = arith.constant 0 : i32
    %c0_i32_0 = arith.constant 0 : i32
    %c0_i32_1 = arith.constant 0 : i32
    return %arg1, %c0_i32, %c0_i32_0 : i32, i32, i32
  }
  func.func @transform_3(%arg0: i32, %arg1: i32) -> (i32, i32, i32) {
    %c0_i32 = arith.constant 0 : i32
    %c0_i32_0 = arith.constant 0 : i32
    %c0_i32_1 = arith.constant 0 : i32
    return %arg1, %c0_i32, %c0_i32_0 : i32, i32, i32
  }
  func.func @transform_4(%arg0: i32, %arg1: i32) -> (i32, i32, i32) {
    %c0_i32 = arith.constant 0 : i32
    %c0_i32_0 = arith.constant 0 : i32
    %c0_i32_1 = arith.constant 0 : i32
    return %arg1, %c0_i32, %c0_i32_0 : i32, i32, i32
  }
  func.func @transform_5(%arg0: i32, %arg1: i32) -> (i32, i32) {
    %c0_i32 = arith.constant 0 : i32
    %c0_i32_0 = arith.constant 0 : i32
    %c0_i32_1 = arith.constant 0 : i32
    return %c0_i32, %c0_i32_0 : i32, i32
  }
  func.func @transform_6(%arg0: i32, %arg1: i32) -> (i32, i32) {
    %c0_i32 = arith.constant 0 : i32
    %c0_i32_0 = arith.constant 0 : i32
    %c0_i32_1 = arith.constant 0 : i32
    return %c0_i32, %c0_i32_0 : i32, i32
  }
  func.func @transform_7(%arg0: i32, %arg1: i32) -> (i32, i32) {
    %c0_i32 = arith.constant 0 : i32
    %c0_i32_0 = arith.constant 0 : i32
    %c0_i32_1 = arith.constant 0 : i32
    return %c0_i32, %c0_i32_0 : i32, i32
  }
  func.func @transform_8(%arg0: i32, %arg1: i32) -> (i32, i32, i32) {
    %c0_i32 = arith.constant 0 : i32
    %c0_i32_0 = arith.constant 0 : i32
    %c0_i32_1 = arith.constant 0 : i32
    return %arg0, %c0_i32, %c0_i32_0 : i32, i32, i32
  }
}

</mosaic_0001>

<bundles_post_ra>
// kernel: tpu_custom_call.1
= control target key start
LH: loop header
LB: loop body
LE: loop exit
PB: predicated region body
PF: predicated region fallthrough
CT: control target
= control target key end

     0   :  { %s1286_s0 = inlined_call_operand.vmem [shape: f32[2,8,32], index: 0, kind: input, shape index: {}]   ;;  %s1287_s1 = inlined_call_operand.vmem [shape: f32[2,32,16], index: 1, kind: input, shape index: {}]   ;;  %s1288_s2 = inlined_call_operand.vmem [shape: f32[2,32,8], index: 2, kind: input, shape index: {}]   ;;  %s1289_s3 = inlined_call_operand.vmem [shape: f32[2,32,8], index: 3, kind: input, shape index: {}]   ;;  %s1290_s4 = inlined_call_operand.vmem [shape: f32[2,16,32], index: 4, kind: input, shape index: {}]   ;;  %s1291_s5 = inlined_call_operand.vmem [shape: f32[8,8], index: 5, kind: input, shape index: {}]   ;;  %s1292_s6 = inlined_call_operand.vmem [shape: f32[8,8], index: 6, kind: input, shape index: {}]   ;;  %s1293_s7 = inlined_call_operand.vmem [shape: f32[1,32], index: 7, kind: input, shape index: {}]   ;;  %s1294_s8 = inlined_call_operand.hbm [shape: f32[2,8,32], index: 8, kind: output, shape index: {}]  }
   0x1   :  { %1305 = sst [smem:[#allocation15_spill]] %s1294_s8 }
   0x2   :  { %13 = vsyncpa [#allocation4], 0 }
   0x3   :  { %15 = vsyncpa [#allocation4 + $0x1], 0  ;;  %s1101_s27 = smov 0   ;;  %s1103_s28 = smov 0  }
   0x4   :  { %s1105_s29 = smov 0   ;;  %s1107_s30 = smov 0  }
   0x5   :  { %s1109_s9 = smov 0   ;;  %s1111_s10 = smov 0  }
   0x6   :  { %s1113_s11 = smov 0   ;;  %s1115_s12 = smov 0  }
   0x7 LB: > { %1306 = sst [smem:[#allocation6_spill]] %s1020_s27  ;;  %s832_s13 = sadd.s32 4294967295, %s1048_s12   ;;  %s1048_s12 = sphi %s1115_s12, %s21_s12   ;;  %s1044_s11 = sphi %s1113_s11, %s1328_s11   ;;  %s1040_s10 = sphi %s1111_s10, %s1327_s10   ;;  %s1036_s9 = sphi %s1109_s9, %s1326_s9   ;;  %s1032_s30 = sphi %s1107_s30, %s1325_s30   ;;  %s1028_s29 = sphi %s1105_s29, %s1324_s29   ;;  %s1024_s28 = sphi %s1103_s28, %s1330_s28   ;;  %s1020_s27 = sphi %s1101_s27, %s1329_s27  }
   0x8   : > { %1307 = sst [smem:[#allocation7_spill]] %s1028_s29  ;;  %s833_s14 = sadd.s32 4294967294, %s1048_s12  }
   0x9   : > { %1308 = sst [smem:[#allocation8_spill]] %s1040_s10  ;;  %s30_s15 = sadd.s32 1, %s1040_s10 }
   0xa   : > { %1309 = sst [smem:[#allocation9_spill]] %s1044_s11  ;;  %p31_p0 = scmp.ge.s32.totalorder %s30_s15, 2 }
   0xb   : > { %1310 = sst [smem:[#allocation10_spill]] %s1048_s12  ;;  %s33_s16 = sadd.s32 1, %s1044_s11 }
   0xc   : > { %p243_p1 = scmp.ne.s32.totalorder %s1028_s29, %s1024_s28  ;;  %p244_p2 = scmp.eq.s32.totalorder %s832_s13, 3 }
   0xd   : > { %s1332_s15 = smov (%p31_p0, %s30_s15), 0  ;;  %s1334_s16 = smov (!%p31_p0, %s33_s16), %s1044_s11 }
   0xe   : > { %1311 = sst [smem:[#allocation11_spill]] %s1332_s15  ;;  %p1150_p3 = por %p244_p2, %p243_p1 }
   0xf   : > { %p249_p4 = scmp.ne.s32.totalorder %s1024_s28, %s1020_s27  ;;  %p35_p5 = scmp.ge.s32.totalorder %s1334_s16, 2 }
  0x10   : > { %p250_p6 = scmp.eq.s32.totalorder %s833_s14, 3  ;;  %p836_p7 = scmp.ge.s32.totalorder %s1048_s12, 1 }
  0x11   : > { %p316_p8 = scmp.lt.s32.totalorder %s1048_s12, 5  ;;  %s1336_s16 = smov (%p35_p5, %s1334_s16), 0 }
  0x12   : > { %1313 = sst [smem:[#allocation12_spill]] %s1336_s16  ;;  %p1160_p9 = por %p250_p6, %p249_p4 }
  0x13   : > { %p317_p10 = pnand %p836_p7, %p316_p8  ;;  %s230_s19 = ssub.s32 %s1044_s11, %s1336_s16 }
  0x14   : > { %s1314_s18 = scalar_select %p1160_p9, 1, 0 }
  0x15   : > { %s233_s20 = sadd.s32 1, %s1028_s29  ;;  %p231_p11 = scmp.eq.s32.totalorder %s230_s19, 0 }
  0x16   : > { %1315 = sst [smem:[#allocation13_spill]] %s1314_s18  ;;  %320 = sbr.rel (%p317_p10) target bundleno = 1201 (0x4b1), region = 52 }
  0x17   : > { %s1168_s21 = scalar_select %p231_p11, %s1028_s29, %s233_s20  }
  0x18   : > { %s1299_s22 = sand.u32 (!%p317_p10), 1, %s1024_s28   ;;  %p369_p12 = scmp.lt.s32.totalorder (!%p317_p10), %s1036_s9, 1 }
  0x19   : > { %1316 = sst [smem:[#allocation14_spill]] %s1168_s21  ;;  %s1174_s23 = sshll.u32 (!%p317_p10), %s1299_s22, 3 }
  0x1a   : > { %p373_p13 = scmp.lt.s32.totalorder (!%p317_p10), %s1032_s30, 1  ;;  %p847_p0 = scmp.ne.s32.totalorder (!%p317_p10), %s1032_s30, 0 }
  0x1b   : > { %s370_s24 = scalar_select %p369_p12, %s1036_s9, 1 }
  0x1c   : > { %s374_s25 = scalar_select %p373_p13, %s1032_s30, 1 }
  0x1d   : > { %s838_s26 = sshll.u32 %s370_s24, 3  ;;  %396 = sbr.rel (%p847_p0) target bundleno = 36 (0x24), region = 56 }
  0x1e   : > { %s372_s19 = scalar_lea.vmem %s1286_s0, %s838_s26  ;;  %s864_s20 = sshll.u32 %s374_s25, 5 }
  0x1f   : > { %s377_s11 = scalar_lea.vmem %s1287_s1, %s864_s20  ;;  %s382_s29 = scalar_lea.vmem %s1288_s2, %s864_s20 }
  0x20   : > { %s1191_s27 = scalar_lea.vmem %s1289_s3, %s864_s20  ;;  %s867_s12 = sshll.u32 %s374_s25, 4 }
  0x21   : > { %s1196_s13 = scalar_lea.vmem %s1290_s4, %s867_s12  ;;  %s368_s26 = scalar_lea.vmem [#allocation3], %s1174_s23 }
  0x22   : > { %vm397_vm0 = vcmask 261120   ;;  %v1050_v0 = vmov 0.0  }
  0x23   : > { %398 = vst.msk [vmem:[#allocation2] sm:$0xff] %vm397_vm0, %v1050_v0 }
  0x24 PF: > { %v403_v1 = vld [vmem:[%s377_s11 + $0x18] sm:$0xff]  ;;  %v402_v2 = vld [vmem:[%s377_s11 + $0x10] sm:$0xff]  ;;  %v476_v3 = vld [vmem:[%s1291_s5] sm:$0xff]  ;;  %s1051_s16 = smov 8   ;;  %vm404_vm1 = vcmask 261120   ;;  %s1052_s8 = smov 124  }
  0x25   : > { %420 = vmatpush.msra.mxu0 %v403_v1  ;;  %v401_v4 = vld [vmem:[%s377_s11 + $0x8] sm:$0xff]  ;;  %564 = vrot.lane.b32.xlu1 %v476_v3, %s1051_s16  ;;  %v431_v5 = vld [vmem:[%s382_s29 + $0x18] sm:$0xff]  ;;  %v430_v6 = vld [vmem:[%s382_s29 + $0x10] sm:$0xff]  ;;  %s1053_s12 = smov 116   ;;  %vm486_vm2 = vcmask 31744   ;;  %vm501_vm3 = vcmask 64512  }
  0x26   : > { %444 = vmatpush.msra.mxu1 %v431_v5  ;;  %v400_v7 = vld [vmem:[%s377_s11] sm:$0xff]  ;;  %v429_v8 = vld [vmem:[%s382_s29 + $0x8] sm:$0xff]  ;;  %s1054_s11 = smov 4   ;;  %s1055_s21 = smov 120   ;;  %v455_v35 = vld [vmem:[%s1191_s27 + $0x18] sm:$0xff] }
  0x27   : > { %421 = vmatpush.msra.mxu0 %v402_v2  ;;  %v399_v9 = vld [vmem:[%s372_s19] sm:$0xff]  ;;  %v454_v36 = vld [vmem:[%s1191_s27 + $0x10] sm:$0xff]  ;;  %468 = vmatpush.msra.mxu2 %v455_v35  ;;  %v453_v37 = vld [vmem:[%s1191_s27 + $0x8] sm:$0xff]  ;;  %p859_p1 = scmp.ne.s32.totalorder %s1032_s30, 1 }
  0x28   : > { %445 = vmatpush.msra.mxu1 %v430_v6  ;;  %v428_v10 = vld [vmem:[%s382_s29] sm:$0xff]  ;;  %v637_v61 = vld [vmem:[%s1196_s13 + $0x8] sm:$0xff] }
  0x29   : > { %422 = vmatpush.msra.mxu0 %v401_v4  ;;  %v477_v16 = vld [vmem:[%s1292_s6] sm:$0xff]  ;;  %469 = vmatpush.msra.mxu2 %v454_v36 }
  0x2a   : > { %446 = vmatpush.msra.mxu1 %v429_v8  ;;  %v452_v38 = vld [vmem:[%s1191_s27] sm:$0xff] }
  0x2b   : > { %423 = vmatpush.msra.mxu0 %v400_v7  ;;  %470 = vmatpush.msra.mxu2 %v453_v37  ;;  %v562_v56 = vld [vmem:[%s1196_s13] sm:$0xff] }
  0x2c   : > { %848 = vmatmul.msk.f32.vlgmr.msra.gmra.mxu0 %vm404_vm1, %v399_v9  ;;  %447 = vmatpush.msra.mxu1 %v428_v10  ;;  %v684_v1 = vld [vmem:[#allocation2] sm:$0xff] }
  0x2d   : > { %849 = vmatmul.msk.f32.vlgmr.msra.gmra.mxu1 %vm404_vm1, %v399_v9  ;;  %471 = vmatpush.msra.mxu2 %v452_v38 }
  0x2e   : > { %850 = vmatmul.msk.f32.vlgmr.msra.gmra.mxu2 %vm404_vm1, %v399_v9 }
  0x2f   : > { %656 = vmatpush.msrb.mxu2 %v637_v61 }
  0x97   : > { %v565_v29 = vpop.permute.xlu1 %564 }
  0xa9   : > { %v425_v11 = vpop.f32.mrf.mxu0 }
  0xaa   : > { %492 = vrot.lane.b32.xlu0 %v425_v11, %s1052_s8  ;;  %v449_v12 = vpop.f32.mrf.mxu1  ;;  %v490_v27 = vmul.f32 %v476_v3, %v425_v11  ;;  %v567_v30 = vmul.f32 %v565_v29, %v425_v11 }
  0xab   : > { %480 = vrot.lane.b32.xlu2 %v449_v12, %s1052_s8  ;;  %v478_v15 = vmul.f32 %v476_v3, %v449_v12 }
  0xb1   : > { %v473_v47 = vpop.f32.mrf.mxu2 }
  0xb2   : > { %568 = vrot.lane.b32.xlu0 %v425_v11, %s1053_s12  ;;  %632 = vmatpush.msrb.mxu1 %v473_v47 }
  0xb3   : > { %483 = vrot.lane.b32.xlu2 %v449_v12, %s1054_s11 }
  0xba   : > { %495 = vrot.lane.b32.xlu0 %v425_v11, %s1054_s11 }
 0x105   : > { %v481_v13 = vpop.permute.xlu2 %480 }
 0x10d   : > { %v484_v14 = vpop.permute.xlu2 %483 }
 0x10e   : > { %v487_v17 = vsel %vm486_vm2, %v481_v13, %v484_v14 }
 0x10f   : > { %v488_v18 = vmul.f32 %v487_v17, %v477_v16 }
 0x111   : > { %v489_v19 = vadd.f32 %v488_v18, %v478_v15 }
 0x113   : > { %851 = vmatpush.xpose.msk.msra.mxu3 %vm501_vm3, %v489_v19  ;;  %854 = vmatpush.xpose.msk.msrb.mxu0 %vm501_vm3, %v489_v19 }
 0x117   : > { %557 = vmatpush.msrb.mxu3 %v473_v47 }
 0x11c   : > { %v493_v20 = vpop.permute.xlu0 %492 }
 0x124   : > { %v569_v21 = vpop.permute.xlu0 %568 }
 0x125   : > { %v571_v22 = vsel %vm486_vm2, %v569_v21, %v493_v20 }
 0x126   : > { %v572_v23 = vmul.f32 %v571_v22, %v477_v16 }
 0x128   : > { %574 = vrot.lane.b32.xlu1 %v572_v23, %s1051_s16 }
 0x12c   : > { %v496_v24 = vpop.permute.xlu0 %495 }
 0x12d   : > { %v498_v25 = vsel %vm486_vm2, %v493_v20, %v496_v24 }
 0x12e   : > { %v499_v26 = vmul.f32 %v498_v25, %v477_v16 }
 0x130   : > { %v500_v28 = vadd.f32 %v499_v26, %v490_v27 }
 0x132   : > { %852 = vmatmul.msk.f32.vlgmr.msra.gmra.mxu3 %vm501_vm3, %v500_v28 }
 0x133   : > { %679 = vmatpush.msra.mxu3 %v562_v56 }
 0x19a   : > { %v575_v31 = vpop.permute.xlu1 %574 }
 0x19b   : > { %v577_v32 = vadd.f32 %v575_v31, %v567_v30 }
 0x19d   : > { %579 = vrot.lane.b32.xlu1 %v577_v32, %s1055_s21 }
 0x1b5   : > { %v525_v33 = vpop.f32.mrf.mxu3 }
 0x1b6   : > { %v528_v34 = vsel %vm501_vm3, %v525_v33, -inf }
 0x1b7   : > { %529 = vmax.xlane.f32.xlu2 %v528_v34 }
 0x20f   : > { %v580_v39 = vpop.permute.xlu1 %579 }
 0x210   : > { %855 = vmatmul.msk.f32.vlgmr.msrb.gmra.mxu0 %vm501_vm3, %v580_v39 }
 0x22a   : > { %v530_v40 = vpop.xlane.xlu2 %529 }
 0x22b   : > { %v531_v41 = vsub.f32 %v525_v33, %v530_v40 }
 0x22d   : > { %v532_v42 = vmul.f32 1.442695, %v531_v41 }
 0x22f   : > { %945 = vpow2.f32 %v532_v42 }
 0x235   : > { %v946_v43 = vpop.eup %945 }
 0x236   : > { %v534_v44 = vsel %vm501_vm3, %v946_v43, 0.0 }
 0x237   : > { %535 = vadd.xlane.f32.xlu1 %v534_v44 }
 0x28d   : > { %v600_v45 = vpop.f32.mrf.mxu0 }
 0x28e   : > { %v603_v46 = vsel %vm501_vm3, %v600_v45, -inf }
 0x28f   : > { %604 = vmax.xlane.f32.xlu0 %v603_v46 }
 0x2aa   : > { %v536_v48 = vpop.xlane.xlu1 %535 }
 0x2ab   : > { %947 = vrcp.f32 %v536_v48 }
 0x2b1   : > { %v948_v49 = vpop.eup %947 }
 0x2b2   : > { %v538_v50 = vmul.f32 %v948_v49, %v946_v43 }
 0x2b4   : > { %853 = vmatmul.msk.f32.vlgmr.msrb.gmra.mxu3 %vm501_vm3, %v538_v50 }
 0x302   : > { %v605_v51 = vpop.xlane.xlu0 %604 }
 0x303   : > { %v606_v52 = vsub.f32 %v600_v45, %v605_v51 }
 0x305   : > { %v607_v53 = vmul.f32 1.442695, %v606_v52 }
 0x307   : > { %949 = vpow2.f32 %v607_v53 }
 0x30d   : > { %v950_v54 = vpop.eup %949 }
 0x30e   : > { %v609_v55 = vsel %vm501_vm3, %v950_v54, 0.0 }
 0x30f   : > { %610 = vadd.xlane.f32.xlu2 %v609_v55 }
 0x337   : > { %v559_v57 = vpop.f32.mrf.mxu3 }
 0x338   : > { %858 = vmatmul.msk.f32.vlgmr.msra.gmra.mxu3 %vm501_vm3, %v559_v57 }
 0x382   : > { %v611_v58 = vpop.xlane.xlu2 %610 }
 0x383   : > { %951 = vrcp.f32 %v611_v58 }
 0x389   : > { %v952_v59 = vpop.eup %951 }
 0x38a   : > { %v613_v60 = vmul.f32 %v952_v59, %v950_v54 }
 0x38c   : > { %856 = vmatmul.msk.f32.vlgmr.msrb.gmra.mxu1 %vm501_vm3, %v613_v60 }
 0x3bb   : > { %v681_v63 = vpop.f32.mrf.mxu3 }
 0x409   : > { %v634_v62 = vpop.f32.mrf.mxu1 }
 0x40a   : > { %857 = vmatmul.msk.f32.vlgmr.msrb.gmra.mxu2 %vm501_vm3, %v634_v62 }
 0x48d   : > { %v658_v0 = vpop.f32.mrf.mxu2 }
 0x48e   : > { %v682_v2 = vadd.f32 %v681_v63, %v658_v0  ;;  %690 = sbr.rel (%p859_p1) target bundleno = 1181 (0x49d), region = 60 }
 0x490   : > { %v685_v3 = vadd.f32 %v684_v1, %v682_v2 }
 0x492   : > { %686 = vst.msk [vmem:[#allocation2] sm:$0xff] %vm404_vm1, %v685_v3 }
 0x493   : > { %v953_v5 = vld [vmem:[%s1293_s7] ss:$0 sm:$0xff] }
 0x499   : > { %v691_v4 = vld [vmem:[#allocation2] sm:$0xff] }
 0x49a   : > { %v696_v6 = vadd.f32 %v953_v5, %v691_v4 }
 0x49c   : > { %697 = vst.msk [vmem:[%s368_s26] sm:$0xff] %vm404_vm1, %v696_v6 }
 0x49d PF: > { %s861_s25 = sshll.u32 %s1036_s9, 3  ;;  %s1317_s30 = sld [smem:[#allocation15_spill]] }
 0x49e   : > { %s711_s13 = sshll.u32 %s368_s26, 4  ;;  %s1319_s15 = sand.u32 1, %s1024_s28   ;;  %s712_s13 = int_to_ptr.vmem [resolvable:$true] %s711_s13 }
 0x49f   : > { %s699_s16 = scalar_lea.sflag [#allocation4], %s1319_s15 }
 0x4a3   : > { %s1318_s20 = smov %s1317_s30  ;;  %s709_s24 = scalar_lea.hbm %s1317_s30, %s861_s25 }
 0x4a4   : > { %s713_s10 = sshll.u32 %s709_s24, 4  ;;  %s974_s29 = scalar_lea.hbm %s1318_s20, 16  ;;  %s714_s10 = int_to_ptr.hbm [resolvable:$true] %s713_s10 }
 0x4a5   : > { %s968_s8 = sshra.s32 %s714_s10, 4  ;;  %s969_s8 = int_to_ptr.hbm [resolvable:$true] %s968_s8 }
 0x4a6   : > { %s970_s12 = scalar_lea.hbm %s969_s8, 8  ;;  %p975_p6 = scmp.lt.s32.totalorder %s969_s8, %s1318_s20 }
 0x4a7   : > { %p971_p2 = scmp.ne.s32.totalorder %s969_s8, %s970_s12  ;;  %p976_p7 = scmp.lt.s32.totalorder %s974_s29, %s970_s12 }
 0x4a9   : > { %p972_p4 = pnand %p971_p2, %p1150_p3  ;;  %p977_p8 = por %p976_p7, %p975_p6 }
 0x4ab   : > { %p973_p5 = pneg %p972_p4 }
 0x4ad   : > { %p978_p10 = pnand %p977_p8, %p973_p5 }
 0x4af   : > { %981 = shalt.err (!%p978_p10)
}
 0x4b0   : > { %868 = dma.vmem_to_hbm [thread:$0]  (%p1150_p3), %s712_s13, 128, %s714_s10, %s699_s16  }
 0x4b1 PF: > { %s1320_s23 = sld [smem:[#allocation10_spill]] }
 0x4b2   : > { %s1321_s26 = sld [smem:[#allocation6_spill]] }
 0x4b7   : > { %p874_p11 = scmp.ge.s32.totalorder %s1320_s23, 2 }
 0x4b8   : > { %s725_s22 = sand.u32 1, %s1321_s26  }
 0x4b9   : > { %p871_p12 = pnand %p874_p11, %p1160_p9  ;;  %s726_s25 = scalar_lea.sflag [#allocation4], %s725_s22 }
 0x4bb   : > { %p872_p13 = pneg %p871_p12 }
 0x4bd   : > { %1015 = dma.done.wait (%p872_p13), %s726_s25, 128  }
 0x4be   : > { %1017 = vsyncadd (%p872_p13), %s726_s25, 4294967168  ;;  %s21_s12 = sadd.s32 1, %s1320_s23   ;;  %s1323_s14 = sld [smem:[#allocation7_spill]] }
 0x4bf   : > { %p18_p0 = scmp.ge.s32.totalorder %s21_s12, 6   ;;  %s1324_s29 = sld [smem:[#allocation14_spill]] }
 0x4c0   : > { %s1325_s30 = sld [smem:[#allocation8_spill]]  ;;  %s1329_s27 = smov %s1024_s28 }
 0x4c1   : > { %s1326_s9 = sld [smem:[#allocation9_spill]]  ;;  %20 = sbr.rel (!%p18_p0) target bundleno = 7 (0x7), region = 107 }
 0x4c2   : > { %s1327_s10 = sld [smem:[#allocation11_spill]] }
 0x4c3   : > { %s1328_s11 = sld [smem:[#allocation12_spill]] }
 0x4c4   : > { %s1330_s28 = smov %s1323_s14 }
 0x4c6   :  { %732 = vsyncpa [#allocation4], 1 }
 0x4c7   :  { %734 = vsyncpa [#allocation4 + $0x1], 1 }

</bundles_post_ra>
